<compile_context>
chip_gen: v7x
topology: tpu7x:2x2x1
jax: 0.10.0
libtpu: 0.0.40
codegen_flags: <defaults>
</compile_context>

<pallas_src>
import jax
import jax.numpy as jnp
import numpy as np
from jax import lax
from jax.experimental import pallas as pl
from jax.experimental.pallas import tpu as pltpu


def _round_up(x, m):
    return ((x + m - 1) // m) * m


def _vmem_budget():
    """Generation-aware (block-VMEM budget, scoped vmem limit) in bytes."""
    try:
        cap = int(pltpu.get_tpu_info().vmem_capacity_bytes)
    except Exception:
        cap = 64 << 20                      # conservative default (v7x-sized)
    limit = min(64 << 20, max(32 << 20, cap // 2))   # 64 MiB on 128 MiB parts, 32 MiB on v7x
    budget = min(48 << 20, (3 * limit) // 4)          # 48 MiB v5e/v6e, 24 MiB v7x
    return budget, limit


def _choose_bt(batch, c_in, c_out, hide_p, s, itemsize, budget):
    """Batch elements per grid step.

    Sized so double-buffered in/out blocks plus live f32 intermediates stay
    under the per-generation budget, while keeping >= 4 grid steps when the
    batch allows it (so each of v7x's 2 TensorCores pipelines >= 2 blocks,
    and v5e/v6e keep prefetch/writeback overlap).
    """
    per_b = 2 * (c_in + c_out) * s * itemsize        # double-buffered x/out blocks
    per_b += 4 * (2 * hide_p) * s * 4                # ~4 live (2*hp, S) f32 temps
    cap = max(1, budget // max(per_b, 1))
    cap = min(cap, max(1, pl.cdiv(batch, 4)))        # keep >= 4 steps when possible
    return int(max(1, min(batch, cap)))


def _make_kernel(bt, hide_p, cd):
    def kernel(x_ref, w01_ref, b01_ref, w2_ref, b2_ref, o_ref):
        # Weights/biases are tiny and constant across the grid; load once.
        w01 = w01_ref[...]          # (2*hp, C)        compute dtype
        b01 = b01_ref[...]          # (2*hp, 1)        f32
        w2 = w2_ref[...]            # (inplanes, hp)   compute dtype
        b2 = b2_ref[...]            # (inplanes, 1)    f32

        def body(b, carry):
            xb = x_ref[b]           # (C, S), native input dtype
            if xb.dtype != cd:      # optional in-kernel cast (no wrapper HBM pass)
                xb = xb.astype(cd)

            # Fused conv0_0 / conv0_1: one block-diagonal MXU matmul, f32 acc.
            y = jnp.dot(w01, xb, preferred_element_type=jnp.float32) + b01
            y0 = y[:hide_p, :]      # hp multiple of 8 -> sublane-aligned, free split
            y1 = y[hide_p:, :]

            # AFP (fovea): numerically-stable spatial softmax gate on y0, + y1.
            # S is the true spatial extent (no padding) -> no mask needed.
            m = jnp.max(y0, axis=-1, keepdims=True)
            e = jnp.exp(y0 - m)
            denom = jnp.sum(e, axis=-1, keepdims=True)
            # EUP reciprocal on the tiny (hp,1) column + one Newton step:
            # ~f32 accuracy, no (hp, S) VPU divide.
            inv = pl.reciprocal(denom, approx=True)
            inv = inv * (2.0 - denom * inv)
            mask = e * inv
            z = mask * y0 + y1      # (hp, S) f32

            # conv1x1 : hide -> inplanes (f32 accumulation).
            out = jnp.dot(w2, z.astype(cd),
                          preferred_element_type=jnp.float32) + b2
            o_ref[b] = out.astype(o_ref.dtype)
            return carry

        # Cap unroll to keep the instruction stream / vreg live ranges bounded
        # when bt is large; full unroll for small bt (LLO scheduler visibility).
        lax.fori_loop(0, bt, body, 0, unroll=min(bt, 8))

    return kernel


def prompt_block(x, params, *, compute_dtype=None):
    """x: (B, C, H, W) NCHW like the PyTorch module; returns (B, C//2, H, W).

    compute_dtype: dtype fed to the MXU (default: x.dtype).  If it differs from
    x.dtype the cast happens inside the kernel; HBM streams stay in x.dtype and
    accumulation / softmax stay f32.  Output dtype == x.dtype.
    """
    B, C, H, W = x.shape
    inplanes = C // 2
    hide = params["w0"].shape[0]
    S = H * W
    hp = _round_up(hide, 8)         # sublane-aligned y0/y1 split

    cd = jnp.dtype(x.dtype if compute_dtype is None else compute_dtype)

    # Pack conv0_0 / conv0_1 into one block-diagonal weight + stacked bias.
    # (Weights are tiny; this is negligible HBM traffic.)
    w01 = jnp.zeros((2 * hp, C), cd)
    w01 = w01.at[:hide, :inplanes].set(params["w0"].astype(cd))
    w01 = w01.at[hp:hp + hide, inplanes:].set(params["w1"].astype(cd))
    b01 = jnp.zeros((2 * hp, 1), jnp.float32)
    b01 = b01.at[:hide].set(params["b0"].astype(jnp.float32))
    b01 = b01.at[hp:hp + hide].set(params["b1"].astype(jnp.float32))

    w2p = jnp.zeros((inplanes, hp), cd)
    w2p = w2p.at[:, :hide].set(params["w2"].astype(cd))
    b2p = params["b2"].astype(jnp.float32).reshape(inplanes, 1)

    # Metadata-only reshape; NO pad / cast / slice passes on x or the output.
    xf = x.reshape(B, C, S)

    budget, vmem_limit = _vmem_budget()
    bt = _choose_bt(B, C, inplanes, hp, S, x.dtype.itemsize, budget)
    grid = (pl.cdiv(B, bt),)        # ragged last batch block is allowed

    out = pl.pallas_call(
        _make_kernel(bt, hp, cd),
        out_shape=jax.ShapeDtypeStruct((B, inplanes, S), x.dtype),
        grid_spec=pltpu.PrefetchScalarGridSpec(
            num_scalar_prefetch=0,
            grid=grid,
            in_specs=[
                # Last two dims equal the full array dims -> legal for any C, S.
                pl.BlockSpec((bt, C, S), lambda i: (i, 0, 0)),
                pl.BlockSpec((2 * hp, C), lambda i: (0, 0)),
                pl.BlockSpec((2 * hp, 1), lambda i: (0, 0)),
                pl.BlockSpec((inplanes, hp), lambda i: (0, 0)),
                pl.BlockSpec((inplanes, 1), lambda i: (0, 0)),
            ],
            out_specs=pl.BlockSpec((bt, inplanes, S), lambda i: (i, 0, 0)),
        ),
        compiler_params=pltpu.CompilerParams(
            dimension_semantics=("parallel",),
            vmem_limit_bytes=vmem_limit),
    )(xf, w01, b01, w2p, b2p)

    return out.reshape(B, inplanes, H, W)


def init_params(key, inplanes, hide_channel):
    """Deterministic init matching the module's shapes.

    Conv weights: xavier_uniform (as the module's init loop does for dim>1).
    Conv biases : PyTorch Conv2d default uniform(-1/sqrt(fan_in), 1/sqrt(fan_in)).
    """
    ks = jax.random.split(key, 6)

    def xavier(k, fan_out, fan_in):
        bound = float(np.sqrt(6.0 / (fan_in + fan_out)))
        return jax.random.uniform(k, (fan_out, fan_in), jnp.float32, -bound, bound)

    def bias(k, n, fan_in):
        bound = float(1.0 / np.sqrt(fan_in))
        return jax.random.uniform(k, (n, 1), jnp.float32, -bound, bound)

    return {
        "w0": xavier(ks[0], hide_channel, inplanes),
        "b0": bias(ks[1], hide_channel, inplanes),
        "w1": xavier(ks[2], hide_channel, inplanes),
        "b1": bias(ks[3], hide_channel, inplanes),
        "w2": xavier(ks[4], inplanes, hide_channel),
        "b2": bias(ks[5], inplanes, hide_channel),
    }


def prompt_block_ref(x, params):
    """Pure-JAX reference for correctness checking."""
    B, C, H, W = x.shape
    S = H * W
    half = C // 2
    xf = x.reshape(B, C, S).astype(jnp.float32)
    x0, x1 = xf[:, :half], xf[:, half:]
    y0 = jnp.einsum("kc,bcs->bks", params["w0"], x0) + params["b0"][None]
    y1 = jnp.einsum("kc,bcs->bks", params["w1"], x1) + params["b1"][None]
    mask = jax.nn.softmax(y0, axis=-1)
    z = mask * y0 + y1
    out = jnp.einsum("ok,bks->bos", params["w2"], z) + params["b2"][None]
    return out.reshape(B, half, H, W)


if __name__ == "__main__":
    key = jax.random.PRNGKey(0)
    kx, kp, kx2, kx3 = jax.random.split(key, 4)

    # Small shapes consistent with the module: inplanes=4 (input C = 2*inplanes = 8),
    # hide_channel=8, 16x16 spatial, batch 2.
    B, inplanes, hide_channel, H, W = 2, 4, 8, 16, 16
    params = init_params(kp, inplanes, hide_channel)
    x = jax.random.normal(kx, (B, 2 * inplanes, H, W), jnp.float32)

    # f32 path, lane-aligned spatial (S = 256).
    out = jax.block_until_ready(prompt_block(x, params))
    ref = prompt_block_ref(x, params)
    np.testing.assert_allclose(np.asarray(out), np.asarray(ref), rtol=1e-5, atol=1e-5)

    # f32 path, non-multiple-of-128 spatial (S = 100) — full-S block, no padding.
    x2 = jax.random.normal(kx2, (B, 2 * inplanes, 10, 10), jnp.float32)
    out2 = jax.block_until_ready(prompt_block(x2, params))
    ref2 = prompt_block_ref(x2, params)
    np.testing.assert_allclose(np.asarray(out2), np.asarray(ref2), rtol=1e-5, atol=1e-5)

    # Odd batch (exercises the ragged-last-block / cdiv grid path).
    x3 = jax.random.normal(kx3, (5, 2 * inplanes, 8, 8), jnp.float32)
    out3 = jax.block_until_ready(prompt_block(x3, params))
    ref3 = prompt_block_ref(x3, params)
    np.testing.assert_allclose(np.asarray(out3), np.asarray(ref3), rtol=1e-5, atol=1e-5)

    # bf16-fed MXU path (in-kernel cast; f32 accumulation / softmax; f32 output)
    # — loose-tolerance smoke check.
    out_bf = jax.block_until_ready(
        prompt_block(x, params, compute_dtype=jnp.bfloat16))
    np.testing.assert_allclose(np.asarray(out_bf), np.asarray(ref),
                               rtol=1e-1, atol=1e-1)

    print("KERNEL_OK")
</pallas_src>

<mosaic_0001>
module attributes {stable_mosaic.version = 11 : i64} {
  func.func @kernel(%arg0: i32, %arg1: memref<1x8x256xf32, #tpu.memory_space<vmem>>, %arg2: memref<16x8xf32, #tpu.memory_space<vmem>>, %arg3: memref<16x1xf32, #tpu.memory_space<vmem>>, %arg4: memref<4x8xf32, #tpu.memory_space<vmem>>, %arg5: memref<4x1xf32, #tpu.memory_space<vmem>>, %arg6: memref<1x4x256xf32, #tpu.memory_space<vmem>>) attributes {dimension_semantics = [#tpu.dimension_semantics<parallel>], iteration_bounds = array<i64: 2>, scalar_prefetch = 0 : i64, scratch_operands = 0 : i64, tpu.core_type = #tpu.core_type<tc>, window_params = [{transform_indices = @transform_0, window_bounds = array<i64: 1, 8, 256>}, {pipeline_mode = #tpu.pipeline_mode<synchronous>, transform_indices = @transform_1, window_bounds = array<i64: 16, 8>}, {pipeline_mode = #tpu.pipeline_mode<synchronous>, transform_indices = @transform_2, window_bounds = array<i64: 16, 1>}, {pipeline_mode = #tpu.pipeline_mode<synchronous>, transform_indices = @transform_3, window_bounds = array<i64: 4, 8>}, {pipeline_mode = #tpu.pipeline_mode<synchronous>, transform_indices = @transform_4, window_bounds = array<i64: 4, 1>}, {transform_indices = @transform_5, window_bounds = array<i64: 1, 4, 256>}]} {
    %c0 = arith.constant 0 : index
    %c0_0 = arith.constant 0 : index
    %0 = vector.load %arg2[%c0, %c0_0] : memref<16x8xf32, #tpu.memory_space<vmem>>, vector<16x8xf32>
    %c0_1 = arith.constant 0 : index
    %c0_2 = arith.constant 0 : index
    %1 = vector.load %arg3[%c0_1, %c0_2] : memref<16x1xf32, #tpu.memory_space<vmem>>, vector<16x1xf32>
    %c0_3 = arith.constant 0 : index
    %c0_4 = arith.constant 0 : index
    %2 = vector.load %arg4[%c0_3, %c0_4] : memref<4x8xf32, #tpu.memory_space<vmem>>, vector<4x8xf32>
    %c0_5 = arith.constant 0 : index
    %c0_6 = arith.constant 0 : index
    %3 = vector.load %arg5[%c0_5, %c0_6] : memref<4x1xf32, #tpu.memory_space<vmem>>, vector<4x1xf32>
    %c0_i32 = arith.constant 0 : i32
    %4 = arith.index_cast %c0_i32 : i32 to index
    %c0_7 = arith.constant 0 : index
    %c0_8 = arith.constant 0 : index
    %5 = vector.load %arg1[%4, %c0_7, %c0_8] : memref<1x8x256xf32, #tpu.memory_space<vmem>>, vector<1x8x256xf32>
    %6 = vector.shape_cast %5 : vector<1x8x256xf32> to vector<8x256xf32>
    %cst = arith.constant dense<0.000000e+00> : vector<16x256xf32>
    %7 = tpu.matmul %0, %6, %cst {dimension_numbers = #tpu.dot_dimension_numbers<[1], [0], [0], [1], [0, 0, 1, 1], [], []>} : vector<16x8xf32>, vector<8x256xf32>, vector<16x256xf32> -> vector<16x256xf32>
    %8 = vector.broadcast %1 : vector<16x1xf32> to vector<16x256xf32>
    %9 = arith.addf %7, %8 : vector<16x256xf32>
    %10 = vector.extract_strided_slice %9 {offsets = [0, 0], sizes = [8, 256], strides = [1, 1]} : vector<16x256xf32> to vector<8x256xf32>
    %11 = vector.extract_strided_slice %9 {offsets = [8, 0], sizes = [8, 256], strides = [1, 1]} : vector<16x256xf32> to vector<8x256xf32>
    %cst_9 = arith.constant dense<0xFF800000> : vector<8xf32>
    %12 = vector.multi_reduction <maximumf>, %10, %cst_9 [1] : vector<8x256xf32> to vector<8xf32>
    %13 = vector.shape_cast %12 : vector<8xf32> to vector<8x1xf32>
    %14 = vector.broadcast %13 : vector<8x1xf32> to vector<8x256xf32>
    %15 = arith.subf %10, %14 : vector<8x256xf32>
    %16 = math.exp %15 : vector<8x256xf32>
    %cst_10 = arith.constant dense<0.000000e+00> : vector<8xf32>
    %17 = vector.multi_reduction <add>, %16, %cst_10 [1] : vector<8x256xf32> to vector<8xf32>
    %18 = vector.shape_cast %17 : vector<8xf32> to vector<8x1xf32>
    %19 = tpu.reciprocal %18 {approx = true} : vector<8x1xf32> -> vector<8x1xf32>
    %20 = arith.mulf %18, %19 : vector<8x1xf32>
    %cst_11 = arith.constant 2.000000e+00 : f32
    %21 = vector.broadcast %cst_11 : f32 to vector<8x1xf32>
    %22 = arith.subf %21, %20 : vector<8x1xf32>
    %23 = arith.mulf %19, %22 : vector<8x1xf32>
    %24 = vector.broadcast %23 : vector<8x1xf32> to vector<8x256xf32>
    %25 = arith.mulf %16, %24 : vector<8x256xf32>
    %26 = arith.mulf %25, %10 : vector<8x256xf32>
    %27 = arith.addf %26, %11 : vector<8x256xf32>
    %cst_12 = arith.constant dense<0.000000e+00> : vector<4x256xf32>
    %28 = tpu.matmul %2, %27, %cst_12 {dimension_numbers = #tpu.dot_dimension_numbers<[1], [0], [0], [1], [0, 0, 1, 1], [], []>} : vector<4x8xf32>, vector<8x256xf32>, vector<4x256xf32> -> vector<4x256xf32>
    %29 = vector.broadcast %3 : vector<4x1xf32> to vector<4x256xf32>
    %30 = arith.addf %28, %29 : vector<4x256xf32>
    %31 = arith.index_cast %c0_i32 : i32 to index
    %c0_13 = arith.constant 0 : index
    %c0_14 = arith.constant 0 : index
    %32 = vector.load %arg6[%31, %c0_13, %c0_14] : memref<1x4x256xf32, #tpu.memory_space<vmem>>, vector<1x4x256xf32>
    %33 = vector.shape_cast %32 : vector<1x4x256xf32> to vector<4x256xf32>
    %34 = vector.shape_cast %30 : vector<4x256xf32> to vector<1x4x256xf32>
    tpu.vector_store %arg6[%31, %c0_13, %c0_14], %34 {strides = array<i32>} : memref<1x4x256xf32, #tpu.memory_space<vmem>>, vector<1x4x256xf32>,
    %c1_i32 = arith.constant 1 : i32
    return
  }
  func.func @transform_0(%arg0: i32) -> (i32, i32, i32) {
    %c0_i32 = arith.constant 0 : i32
    %c0_i32_0 = arith.constant 0 : i32
    %c0_i32_1 = arith.constant 0 : i32
    return %arg0, %c0_i32, %c0_i32_0 : i32, i32, i32
  }
  func.func @transform_1(%arg0: i32) -> (i32, i32) {
    %c0_i32 = arith.constant 0 : i32
    %c0_i32_0 = arith.constant 0 : i32
    %c0_i32_1 = arith.constant 0 : i32
    return %c0_i32, %c0_i32_0 : i32, i32
  }
  func.func @transform_2(%arg0: i32) -> (i32, i32) {
    %c0_i32 = arith.constant 0 : i32
    %c0_i32_0 = arith.constant 0 : i32
    %c0_i32_1 = arith.constant 0 : i32
    return %c0_i32, %c0_i32_0 : i32, i32
  }
  func.func @transform_3(%arg0: i32) -> (i32, i32) {
    %c0_i32 = arith.constant 0 : i32
    %c0_i32_0 = arith.constant 0 : i32
    %c0_i32_1 = arith.constant 0 : i32
    return %c0_i32, %c0_i32_0 : i32, i32
  }
  func.func @transform_4(%arg0: i32) -> (i32, i32) {
    %c0_i32 = arith.constant 0 : i32
    %c0_i32_0 = arith.constant 0 : i32
    %c0_i32_1 = arith.constant 0 : i32
    return %c0_i32, %c0_i32_0 : i32, i32
  }
  func.func @transform_5(%arg0: i32) -> (i32, i32, i32) {
    %c0_i32 = arith.constant 0 : i32
    %c0_i32_0 = arith.constant 0 : i32
    %c0_i32_1 = arith.constant 0 : i32
    return %arg0, %c0_i32, %c0_i32_0 : i32, i32, i32
  }
}

</mosaic_0001>

<bundles_post_ra>
// kernel: tpu_custom_call.1
= control target key start
LH: loop header
LB: loop body
LE: loop exit
PB: predicated region body
PF: predicated region fallthrough
CT: control target
= control target key end

     0   :  { %10 = vsyncpa [#allocation3], 0  ;;  %s789_s0 = inlined_call_operand.vmem [shape: f32[2,8,256], index: 0, kind: input, shape index: {}]   ;;  %s790_s1 = inlined_call_operand.vmem [shape: f32[16,8], index: 1, kind: input, shape index: {}]   ;;  %s791_s2 = inlined_call_operand.vmem [shape: f32[16,1], index: 2, kind: input, shape index: {}]   ;;  %s792_s3 = inlined_call_operand.vmem [shape: f32[4,8], index: 3, kind: input, shape index: {}]   ;;  %s793_s4 = inlined_call_operand.vmem [shape: f32[4,1], index: 4, kind: input, shape index: {}]   ;;  %s794_s5 = inlined_call_operand.hbm [shape: f32[2,4,256], index: 5, kind: output, shape index: {}]  }
   0x1   :  { %12 = vsyncpa [#allocation3 + $0x1], 0  ;;  %s668_s18 = smov 0   ;;  %s670_s19 = smov 0  }
   0x2   :  { %s672_s20 = smov 0   ;;  %s674_s21 = smov 0  }
   0x3 LB: > { %s689_s22 = sadd.s32 4294967295, %s633_s21   ;;  %s505_s23 = sadd.s32 4294967294, %s633_s21   ;;  %s633_s21 = sphi %s674_s21, %s800_s21   ;;  %s629_s20 = sphi %s672_s20, %s799_s20   ;;  %s625_s19 = sphi %s670_s19, %s798_s19   ;;  %s621_s18 = sphi %s668_s18, %s797_s18  }
   0x4   : > { %s693_s24 = sadd.s32 1, %s633_s21   ;;  %s135_s25 = sadd.s32 1, %s629_s20 }
   0x5   : > { %s132_s26 = ssub.s32 %s633_s21, %s693_s24  ;;  %p145_p0 = scmp.ne.s32.totalorder %s629_s20, %s625_s19 }
   0x6   : > { %p133_p1 = scmp.eq.s32.totalorder %s132_s26, 0  ;;  %p146_p2 = scmp.eq.s32.totalorder %s689_s22, 1 }
   0x7   : > { %p151_p3 = scmp.ne.s32.totalorder %s625_s19, %s621_s18  ;;  %p152_p4 = scmp.eq.s32.totalorder %s505_s23, 1 }
   0x8   : > { %s704_s27 = scalar_select %p133_p1, %s629_s20, %s135_s25  }
   0x9   : > { %p706_p5 = por %p146_p2, %p145_p0  ;;  %p710_p6 = por %p152_p4, %p151_p3 }
   0xa   : > { %p508_p7 = scmp.ge.s32.totalorder %s633_s21, 1  ;;  %p190_p8 = scmp.lt.s32.totalorder %s633_s21, 3 }
   0xc   : > { %p191_p9 = pnand %p508_p7, %p190_p8 }
   0xd   : > { %p218_p10 = scmp.lt.s32.totalorder (!%p191_p9), %s689_s22, 1  ;;  %v225_v0 = vld [vmem:[%s791_s2] sm:$0xff] (!%p191_p9)  ;;  %v635_v1 = vmov (!%p191_p9), 0.0   ;;  %v636_v2 = vmov (!%p191_p9), 0   ;;  %vm241_vm0 = vcmask (!%p191_p9), 64512   ;;  %v224_v6 = vld [vmem:[%s790_s1 + $0x8] sm:$0xff] (!%p191_p9) }
   0xe   : > { %194 = sbr.rel (%p191_p9) target bundleno = 803 (0x323), region = 40  ;;  %312 = vmatprep.mubr.f32.mxu0 (!%p191_p9), %v635_v1  ;;  %563 = vset.pattern.permute.xlu0 (!%p191_p9), %v636_v2  ;;  %v223_v5 = vld [vmem:[%s790_s1] sm:$0xff] (!%p191_p9)  ;;  %v226_v21 = vld [vmem:[%s791_s2 + $0x8] sm:$0xff] (!%p191_p9)  ;;  %s215_s6 = sand.u32 (!%p191_p9), 1, %s625_s19  }
   0xf   : > { %233 = vperm.xlu0 (!%p191_p9), %563, %v225_v0   ;;  %564 = vset.pattern.permute.xlu1 (!%p191_p9), %v636_v2  ;;  %v228_v22 = vld [vmem:[%s793_s4] sm:$0xf] (!%p191_p9)  ;;  %s432_s14 = scalar_lea.sflag (!%p191_p9), [#allocation3], %s215_s6 }
  0x10   : > { %419 = vmatprep.mubr.f32.mxu1 (!%p191_p9), %v635_v1  ;;  %v227_v39 = vld [vmem:[%s792_s3] sm:$0xf] (!%p191_p9) }
  0x15   : > { %s219_s7 = scalar_select %p218_p10, %s689_s22, 1 }
  0x17   : > { %s520_s8 = sshll.u32 %s219_s7, 4  ;;  %s509_s7 = sshll.u32 %s215_s6, 3 }
  0x18   : > { %s222_s11 = scalar_lea.vmem %s789_s0, %s520_s8  ;;  %s521_s8 = sshll.u32 %s689_s22, 7 }
  0x19   : > { %v230_v3 = vld [vmem:[%s222_s11 + $0x8] sm:$0xff]  ;;  %v229_v4 = vld [vmem:[%s222_s11] sm:$0xff]  ;;  %s217_s9 = scalar_lea.vmem [#allocation2], %s509_s7  ;;  %s747_s13 = scalar_lea.hbm %s794_s5, %s521_s8 }
  0x1a   : > { %248 = vmatprep.subr.mxu0 %v230_v3  ;;  %s446_s10 = sshll.u32 %s217_s9, 4  ;;  %s637_s22 = smov [#allocation2]   ;;  %s749_s10 = int_to_ptr.vmem [resolvable:$true] %s446_s10 }
  0x1b   : > { %249 = vmatpush1.msra.mxu0 %v229_v4  ;;  %s571_s15 = scalar_lea.vmem %s749_s10, 128  ;;  %s575_s16 = sshll.u32 %s637_s22, 4  ;;  %s576_s16 = int_to_ptr.vmem [resolvable:$false] %s575_s16 }
  0x1c   : > { %512 = vmatmul.mubr.msk.f32.vlgmr.msra.gmra.mrb[0].mxu0 %vm241_vm0, %v223_v5  ;;  %p572_p11 = scmp.ne.s32.totalorder %s749_s10, %s571_s15  ;;  %s577_s17 = scalar_lea.vmem %s576_s16, 256 }
  0x1d   : > { %318 = vmatprep.mubr.f32.mxu0 %v635_v1  ;;  %p578_p0 = scmp.lt.s32.totalorder %s749_s10, %s576_s16  ;;  %p579_p1 = scmp.lt.s32.totalorder %s577_s17, %s571_s15 }
  0x1e   : > { %p573_p12 = pnand %p572_p11, %p706_p5 }
  0x1f   : > { %p580_p2 = por %p579_p1, %p578_p0 }
  0x20   : > { %513 = vmatmul.mubr.msk.f32.gmra.mrb[2].mxu0 %vm241_vm0, %v224_v6  ;;  %p574_p13 = pneg %p573_p12 }
  0x22   : > { %p581_p3 = pnand %p580_p2, %p574_p13 }
  0x8e   : > { %v234_v7 = vpop.permute.xlu0 %233 }
  0xef   : > { %v314_v8 = vpop.f32.mrb[0].mxu0 }
  0xf0   : > { %v315_v9 = vadd.f32 %v314_v8, %v234_v7  ;;  %v316_v10 = vpop.f32.mrb[1].mxu0 }
  0xf1   : > { %v317_v11 = vadd.f32 %v316_v10, %v234_v7 }
  0xf3   : > { %v325_v12 = vmax.f32 %v315_v9, %v317_v11  ;;  %v320_v23 = vpop.f32.mrb[2].mxu0 }
  0xf4   : > { %v322_v24 = vpop.f32.mrb[3].mxu0 }
  0xf5   : > { %326 = vmax.xlane.f32.xlu0 %v325_v12 }
 0x182   : > { %v327_v13 = vpop.xlane.xlu0 %326 }
 0x183   : > { %v328_v14 = vsub.f32 %v315_v9, %v327_v13  ;;  %v329_v15 = vsub.f32 %v317_v11, %v327_v13 }
 0x185   : > { %v330_v16 = vmul.f32 1.442695, %v328_v14  ;;  %v332_v17 = vmul.f32 1.442695, %v329_v15 }
 0x187   : > { %565 = vpow2.f32 %v330_v16 }
 0x188   : > { %567 = vpow2.f32 %v332_v17 }
 0x191   : > { %v566_v18 = vpop.eup %565 }
 0x192   : > { %v568_v19 = vpop.eup %567 }
 0x193   : > { %v334_v20 = vadd.f32 %v568_v19, %v566_v18 }
 0x195   : > { %335 = vadd.xlane.f32.xlu1 %v334_v20 }
 0x1a6   : > { %238 = vperm.xlu1 %564, %v226_v21  }
 0x1aa   : > { %349 = vperm.xlu1 %564, %v228_v22  }
 0x222   : > { %v336_v25 = vpop.xlane.xlu1 %335 }
 0x223   : > { %569 = vrcp.f32 %v336_v25 }
 0x226   : > { %v239_v30 = vpop.permute.xlu1 %238 }
 0x227   : > { %v321_v31 = vadd.f32 %v320_v23, %v239_v30  ;;  %v323_v32 = vadd.f32 %v322_v24, %v239_v30 }
 0x22a   : > { %v350_v40 = vpop.permute.xlu1 %349 }
 0x22d   : > { %v570_v26 = vpop.eup %569 }
 0x22e   : > { %v338_v27 = vmul.f32 %v570_v26, %v336_v25 }
 0x230   : > { %v339_v28 = vsub.f32 2.0, %v338_v27 }
 0x232   : > { %v340_v29 = vmul.f32 %v570_v26, %v339_v28 }
 0x234   : > { %v342_v33 = vmul.f32 %v568_v19, %v340_v29  ;;  %v341_v34 = vmul.f32 %v566_v18, %v340_v29 }
 0x236   : > { %v344_v35 = vmul.f32 %v342_v33, %v317_v11  ;;  %v343_v36 = vmul.f32 %v341_v34, %v315_v9 }
 0x238   : > { %v346_v37 = vadd.f32 %v344_v35, %v323_v32  ;;  %v345_v38 = vadd.f32 %v343_v36, %v321_v31 }
 0x23a   : > { %355 = vmatprep.subr.mxu1 %v346_v37 }
 0x23b   : > { %356 = vmatpush1.msra.mxu1 %v345_v38 }
 0x23c   : > { %514 = vmatmul.mubr.msk.f32.vlgmr.msra.gmra.mrb[0].mxu1 %vm241_vm0, %v227_v39 }
 0x30f   : > { %v421_v41 = vpop.f32.mrb[0].mxu1 }
 0x310   : > { %v422_v42 = vadd.f32 %v421_v41, %v350_v40  ;;  %v423_v43 = vpop.f32.mrb[1].mxu1 }
 0x311   : > { %v424_v44 = vadd.f32 %v423_v43, %v350_v40 }
 0x313   : > { %v428_v45 = vcombine.low %v422_v42, %v424_v44 }
 0x315   : > { %430 = vst [vmem:[%s217_s9] sm:$0xff] %v428_v45 }
 0x316   : > { %584 = shalt.err (!%p581_p3)
}
 0x317   : > { %s585_s23 = scalar_lea.hbm %s747_s13, 128  ;;  %s589_s30 = scalar_lea.hbm %s794_s5, 256 }
 0x318   : > { %p586_p4 = scmp.ne.s32.totalorder %s747_s13, %s585_s23  ;;  %p590_p9 = scmp.lt.u32.totalorder %s747_s13, %s794_s5 }
 0x319   : > { %p591_p10 = scmp.lt.u32.totalorder %s589_s30, %s585_s23  ;;  %p593_p12 = scmp.lt.u32.totalorder %s585_s23, %s747_s13 }
 0x31a   : > { %p587_p7 = pnand %p586_p4, %p706_p5 }
 0x31b   : > { %p592_p11 = por %p591_p10, %p590_p9 }
 0x31c   : > { %p588_p8 = pneg %p587_p7 }
 0x31d   : > { %p594_p13 = por %p593_p12, %p592_p11 }
 0x31f   : > { %p595_p0 = pnand %p594_p13, %p588_p8 }
 0x321   : > { %598 = shalt.err (!%p595_p0)
}
 0x322   : > { %522 = dma.vmem_to_hbm [thread:$0]  (%p706_p5), %s749_s10, 128, %s747_s13, %s432_s14  }
 0x323 PF: > { %p528_p1 = scmp.ge.s32.totalorder %s633_s21, 2  ;;  %s458_s8 = sand.u32 1, %s621_s18  }
 0x324   : > { %s459_s9 = scalar_lea.sflag [#allocation3], %s458_s8 }
 0x325   : > { %p525_p2 = pnand %p528_p1, %p710_p6 }
 0x327   : > { %616 = dma.done.wait (!%p525_p2), %s459_s9, 128  }
 0x328   : > { %618 = vsyncadd (!%p525_p2), %s459_s9, 4294967168  ;;  %p15_p3 = scmp.ge.s32.totalorder %s693_s24, 4   ;;  %s797_s18 = smov %s625_s19 }
 0x329   : > { %s798_s19 = smov %s629_s20  ;;  %s799_s20 = smov %s704_s27 }
 0x32a   : > { %s800_s21 = smov %s693_s24  ;;  %17 = sbr.rel (!%p15_p3) target bundleno = 3 (0x3), region = 75 }
 0x331   :  { %464 = vsyncpa [#allocation3], 1 }
 0x332   :  { %466 = vsyncpa [#allocation3 + $0x1], 1 }

</bundles_post_ra>
